<compile_context>
chip_gen: v7x
topology: tpu7x:2x2x1
jax: 0.10.0
libtpu: 0.0.40
codegen_flags: <defaults>
</compile_context>

<pallas_src>
import jax
import jax.numpy as jnp
from jax.experimental import pallas as pl
from jax.experimental.pallas import tpu as pltpu


def _mlp_kernel(x_ref, w1_ref, b1_ref, w2_ref, b2_ref, o_ref):
    # x:  (TM, D_in) f32      w1: (D_in, D_hid) bf16    b1: (1, D_hid) f32
    # w2: (D_hid, D_out) bf16 b2: (1, D_out) f32        o:  (TM, D_out) f32
    w1 = w1_ref[...]
    w2 = w2_ref[...]
    x = x_ref[...].astype(w1.dtype)                      # f32 -> bf16 for MXU
    h = jnp.dot(x, w1, preferred_element_type=jnp.float32)
    h = jnp.maximum(h + b1_ref[...], 0.0)                # f32 epilogue (VPU)
    y = jnp.dot(h.astype(w2.dtype), w2, preferred_element_type=jnp.float32)
    o_ref[...] = (y + b2_ref[...]).astype(o_ref.dtype)


def _round_up(n, m):
    return ((n + m - 1) // m) * m


def inner_mlp_forward(x, w1, b1, w2, b2):
    """Pallas-backed forward: relu(x @ w1 + b1) @ w2 + b2."""
    B, d_in = x.shape
    d_hid = w1.shape[1]
    d_out = w2.shape[1]

    # Lane-dense padding: feature dims to multiples of 128 (zero-pad keeps the
    # math identical), batch to a multiple of the M tile.
    d_in_p = _round_up(d_in, 128)
    d_hid_p = _round_up(d_hid, 128)
    d_out_p = _round_up(d_out, 128)
    if B >= 128:
        tm = 128
        b_p = _round_up(B, tm)
    else:
        b_p = _round_up(B, 8)
        tm = b_p

    if (b_p, d_in_p) != (B, d_in):
        x = jnp.pad(x, ((0, b_p - B), (0, d_in_p - d_in)))
    if (d_in_p, d_hid_p) != (d_in, d_hid):
        w1 = jnp.pad(w1, ((0, d_in_p - d_in), (0, d_hid_p - d_hid)))
        b1 = jnp.pad(b1, ((0, 0), (0, d_hid_p - d_hid)))
    if (d_hid_p, d_out_p) != (d_hid, d_out):
        w2 = jnp.pad(w2, ((0, d_hid_p - d_hid), (0, d_out_p - d_out)))
        b2 = jnp.pad(b2, ((0, 0), (0, d_out_p - d_out)))

    grid = (b_p // tm,)

    out = pl.pallas_call(
        _mlp_kernel,
        out_shape=jax.ShapeDtypeStruct((b_p, d_out_p), x.dtype),
        grid_spec=pltpu.PrefetchScalarGridSpec(
            num_scalar_prefetch=0,
            grid=grid,
            in_specs=[
                # x: tiled over batch; weights/biases: resident full-array
                # blocks (constant block index across the grid).
                pl.BlockSpec((tm, d_in_p), lambda i: (i, 0)),
                pl.BlockSpec((d_in_p, d_hid_p), lambda i: (0, 0)),
                pl.BlockSpec((1, d_hid_p), lambda i: (0, 0)),
                pl.BlockSpec((d_hid_p, d_out_p), lambda i: (0, 0)),
                pl.BlockSpec((1, d_out_p), lambda i: (0, 0)),
            ],
            out_specs=pl.BlockSpec((tm, d_out_p), lambda i: (i, 0)),
        ),
        compiler_params=pltpu.CompilerParams(
            # Batch tiles are independent -> shards across v7x's 2 TCs,
            # harmless on single-TC v5e/v6e.
            dimension_semantics=("parallel",),
            # Tiny working set; explicit limit keeps us safe on v7x's 64 MiB.
            vmem_limit_bytes=32 * 1024 * 1024,
        ),
    )(x, w1, b1, w2, b2)

    if (b_p, d_out_p) != (B, d_out):
        out = out[:B, :d_out]
    return out


class InnerMLP:
    """Deterministic inner model: Linear(D_in, D_hid) -> ReLU -> Linear(D_hid, D_out)."""

    def __init__(self, d_in, d_hid, d_out, key):
        k1, k2, k3, k4 = jax.random.split(key, 4)
        # Weights in bf16 (MXU-native); biases stay f32 for the f32 epilogue.
        self.w1 = (jax.random.normal(k1, (d_in, d_hid), jnp.float32)
                   / jnp.sqrt(d_in)).astype(jnp.bfloat16)
        self.b1 = jax.random.normal(k2, (1, d_hid), jnp.float32) * 0.01
        self.w2 = (jax.random.normal(k3, (d_hid, d_out), jnp.float32)
                   / jnp.sqrt(d_hid)).astype(jnp.bfloat16)
        self.b2 = jax.random.normal(k4, (1, d_out), jnp.float32) * 0.01

    def __call__(self, x):
        return inner_mlp_forward(x, self.w1, self.b1, self.w2, self.b2)


class WrappedModel:
    """Exact semantics of the PyTorch WrappedModel: pure delegation."""

    def __init__(self, inner_model):
        self.inner = inner_model

    def __call__(self, *args, **kwargs):
        return self.inner(*args, **kwargs)


if __name__ == "__main__":
    key = jax.random.PRNGKey(0)
    k_param, k_x = jax.random.split(key)

    # Lane-dense, MXU-friendly shapes: M=256 rows per call, features are
    # multiples of 128, grid of 2 parallel batch tiles.
    B, D_IN, D_HID, D_OUT = 256, 128, 256, 128
    inner = InnerMLP(D_IN, D_HID, D_OUT, k_param)
    model = WrappedModel(inner)

    x = jax.random.normal(k_x, (B, D_IN), jnp.float32)

    y = model(x)
    y = jax.block_until_ready(y)

    # Reference in plain JAX using the same precision path (bf16 MXU inputs,
    # f32 accumulation + epilogue).
    h_ref = jnp.maximum(
        jnp.dot(x.astype(jnp.bfloat16), inner.w1,
                preferred_element_type=jnp.float32) + inner.b1, 0.0)
    ref = jnp.dot(h_ref.astype(jnp.bfloat16), inner.w2,
                  preferred_element_type=jnp.float32) + inner.b2

    assert y.shape == (B, D_OUT)
    assert jnp.allclose(y, ref, atol=1e-2, rtol=1e-2), float(
        jnp.max(jnp.abs(y - ref)))

    print("KERNEL_OK")
</pallas_src>

<mosaic_0001>
module attributes {stable_mosaic.version = 11 : i64} {
  func.func @_mlp_kernel(%arg0: i32, %arg1: memref<128x128xf32, #tpu.memory_space<vmem>>, %arg2: memref<128x256xbf16, #tpu.memory_space<vmem>>, %arg3: memref<1x256xf32, #tpu.memory_space<vmem>>, %arg4: memref<256x128xbf16, #tpu.memory_space<vmem>>, %arg5: memref<1x128xf32, #tpu.memory_space<vmem>>, %arg6: memref<128x128xf32, #tpu.memory_space<vmem>>) attributes {dimension_semantics = [#tpu.dimension_semantics<parallel>], iteration_bounds = array<i64: 2>, scalar_prefetch = 0 : i64, scratch_operands = 0 : i64, tpu.core_type = #tpu.core_type<tc>, window_params = [{transform_indices = @transform_0, window_bounds = array<i64: 128, 128>}, {pipeline_mode = #tpu.pipeline_mode<synchronous>, transform_indices = @transform_1, window_bounds = array<i64: 128, 256>}, {pipeline_mode = #tpu.pipeline_mode<synchronous>, transform_indices = @transform_2, window_bounds = array<i64: 1, 256>}, {pipeline_mode = #tpu.pipeline_mode<synchronous>, transform_indices = @transform_3, window_bounds = array<i64: 256, 128>}, {pipeline_mode = #tpu.pipeline_mode<synchronous>, transform_indices = @transform_4, window_bounds = array<i64: 1, 128>}, {transform_indices = @transform_5, window_bounds = array<i64: 128, 128>}]} {
    %c0 = arith.constant 0 : index
    %c0_0 = arith.constant 0 : index
    %0 = vector.load %arg2[%c0, %c0_0] : memref<128x256xbf16, #tpu.memory_space<vmem>>, vector<128x256xbf16>
    %c0_1 = arith.constant 0 : index
    %c0_2 = arith.constant 0 : index
    %1 = vector.load %arg4[%c0_1, %c0_2] : memref<256x128xbf16, #tpu.memory_space<vmem>>, vector<256x128xbf16>
    %c0_3 = arith.constant 0 : index
    %c0_4 = arith.constant 0 : index
    %2 = vector.load %arg1[%c0_3, %c0_4] : memref<128x128xf32, #tpu.memory_space<vmem>>, vector<128x128xf32>
    %3 = arith.truncf %2 : vector<128x128xf32> to vector<128x128xbf16>
    %cst = arith.constant dense<0.000000e+00> : vector<128x256xf32>
    %4 = tpu.matmul %3, %0, %cst {dimension_numbers = #tpu.dot_dimension_numbers<[1], [0], [0], [1], [0, 0, 1, 1], [], []>} : vector<128x128xbf16>, vector<128x256xbf16>, vector<128x256xf32> -> vector<128x256xf32>
    %c0_5 = arith.constant 0 : index
    %c0_6 = arith.constant 0 : index
    %5 = vector.load %arg3[%c0_5, %c0_6] : memref<1x256xf32, #tpu.memory_space<vmem>>, vector<1x256xf32>
    %6 = vector.broadcast %5 : vector<1x256xf32> to vector<128x256xf32>
    %7 = arith.addf %4, %6 : vector<128x256xf32>
    %cst_7 = arith.constant 0.000000e+00 : f32
    %8 = vector.broadcast %cst_7 : f32 to vector<128x256xf32>
    %9 = arith.maximumf %7, %8 : vector<128x256xf32>
    %10 = arith.truncf %9 : vector<128x256xf32> to vector<128x256xbf16>
    %cst_8 = arith.constant dense<0.000000e+00> : vector<128x128xf32>
    %11 = tpu.matmul %10, %1, %cst_8 {dimension_numbers = #tpu.dot_dimension_numbers<[1], [0], [0], [1], [0, 0, 1, 1], [], []>} : vector<128x256xbf16>, vector<256x128xbf16>, vector<128x128xf32> -> vector<128x128xf32>
    %c0_9 = arith.constant 0 : index
    %c0_10 = arith.constant 0 : index
    %12 = vector.load %arg5[%c0_9, %c0_10] : memref<1x128xf32, #tpu.memory_space<vmem>>, vector<1x128xf32>
    %13 = vector.broadcast %12 : vector<1x128xf32> to vector<128x128xf32>
    %14 = arith.addf %11, %13 : vector<128x128xf32>
    %c0_11 = arith.constant 0 : index
    %c0_12 = arith.constant 0 : index
    %15 = vector.load %arg6[%c0_11, %c0_12] : memref<128x128xf32, #tpu.memory_space<vmem>>, vector<128x128xf32>
    tpu.vector_store %arg6[%c0_11, %c0_12], %14 {strides = array<i32>} : memref<128x128xf32, #tpu.memory_space<vmem>>, vector<128x128xf32>,
    return
  }
  func.func @transform_0(%arg0: i32) -> (i32, i32) {
    %c0_i32 = arith.constant 0 : i32
    %c0_i32_0 = arith.constant 0 : i32
    return %arg0, %c0_i32 : i32, i32
  }
  func.func @transform_1(%arg0: i32) -> (i32, i32) {
    %c0_i32 = arith.constant 0 : i32
    %c0_i32_0 = arith.constant 0 : i32
    %c0_i32_1 = arith.constant 0 : i32
    return %c0_i32, %c0_i32_0 : i32, i32
  }
  func.func @transform_2(%arg0: i32) -> (i32, i32) {
    %c0_i32 = arith.constant 0 : i32
    %c0_i32_0 = arith.constant 0 : i32
    %c0_i32_1 = arith.constant 0 : i32
    return %c0_i32, %c0_i32_0 : i32, i32
  }
  func.func @transform_3(%arg0: i32) -> (i32, i32) {
    %c0_i32 = arith.constant 0 : i32
    %c0_i32_0 = arith.constant 0 : i32
    %c0_i32_1 = arith.constant 0 : i32
    return %c0_i32, %c0_i32_0 : i32, i32
  }
  func.func @transform_4(%arg0: i32) -> (i32, i32) {
    %c0_i32 = arith.constant 0 : i32
    %c0_i32_0 = arith.constant 0 : i32
    %c0_i32_1 = arith.constant 0 : i32
    return %c0_i32, %c0_i32_0 : i32, i32
  }
  func.func @transform_5(%arg0: i32) -> (i32, i32) {
    %c0_i32 = arith.constant 0 : i32
    %c0_i32_0 = arith.constant 0 : i32
    return %arg0, %c0_i32 : i32, i32
  }
}

</mosaic_0001>

<bundles_post_ra>
// kernel: tpu_custom_call.1
= control target key start
LH: loop header
LB: loop body
LE: loop exit
PB: predicated region body
PF: predicated region fallthrough
CT: control target
= control target key end

     0   :  { %10 = vsyncpa [#allocation3], 0  ;;  %s1701_s0 = inlined_call_operand.hbm [shape: f32[256,128], index: 0, kind: input, shape index: {}]   ;;  %s1702_s1 = inlined_call_operand.hbm [shape: bf16[128,256], index: 1, kind: input, shape index: {}]   ;;  %s1703_s2 = inlined_call_operand.vmem [shape: f32[1,256], index: 2, kind: input, shape index: {}]   ;;  %s1704_s3 = inlined_call_operand.hbm [shape: bf16[256,128], index: 3, kind: input, shape index: {}]   ;;  %s1705_s4 = inlined_call_operand.vmem [shape: f32[1,128], index: 4, kind: input, shape index: {}]   ;;  %s1706_s5 = inlined_call_operand.hbm [shape: f32[256,128], index: 5, kind: output, shape index: {}]  }
   0x1   :  { %12 = vsyncpa [#allocation3 + $0x1], 0 }
   0x2   :  { %13 = vsyncpa [#allocation6], 0 }
   0x3   :  { %14 = vsyncpa [#allocation4], 0 }
   0x4   :  { %16 = vsyncpa [#allocation4 + $0x1], 0  ;;  %s1352_s18 = smov 0   ;;  %s1354_s19 = smov 0  }
   0x5   :  { %s1356_s20 = smov 0   ;;  %s1358_s21 = smov 0  }
   0x6 LB: > { %s1373_s22 = sadd.s32 4294967295, %s1309_s21   ;;  %s922_s23 = sadd.s32 4294967294, %s1309_s21   ;;  %s1309_s21 = sphi %s1358_s21, %s1726_s21   ;;  %s1305_s20 = sphi %s1356_s20, %s1725_s20   ;;  %s1301_s19 = sphi %s1354_s19, %s1724_s19   ;;  %s1297_s18 = sphi %s1352_s18, %s1723_s18  }
   0x7   : > { %p42_p0 = scmp.ne.s32.totalorder %s1301_s19, %s1297_s18  ;;  %p1707_p1 = scmp.eq.s32.totalorder %s1373_s22, 0 }
   0x8   : > { %p156_p3 = scmp.eq.s32.totalorder %s922_s23, 1  ;;  %p923_p5 = scmp.ge.s32.totalorder %s1309_s21, 1 }
   0x9   : > { %p1382_p4 = por %p1707_p1, %p42_p0  ;;  %p163_p7 = scmp.lt.s32.totalorder %s1309_s21, 3 }
   0xa   : > { %p1387_p6 = por %p156_p3, %p42_p0  ;;  %s1311_s27 = smov [#allocation5]  }
   0xb   : > { %s1710_s24 = scalar_select %p1382_p4, 1, 0 }
   0xc   : > { %s1711_s25 = scalar_select %p1387_p6, 1, 0 }
   0xd   : > { %p1392_p8 = pnand %p923_p5, %p163_p7  ;;  %s175_s28 = sshll.u32 %s1311_s27, 4  ;;  %s1396_s28 = int_to_ptr.vmem [resolvable:$true] %s175_s28 }
   0xe   : > { %s1312_s30 = smov [#allocation7]   ;;  %s1153_s9 = scalar_lea.hbm %s1702_s1, 2048 }
   0xf   : > { %p1051_p9 = pneg %p1392_p8  ;;  %s191_s6 = sshll.u32 %s1312_s30, 4  ;;  %s1407_s6 = int_to_ptr.vmem [resolvable:$true] %s191_s6 }
  0x10   : > { %p1154_p12 = scmp.ne.s32.totalorder %s1702_s1, %s1153_s9  ;;  %p1160_p5 = scmp.lt.u32.totalorder %s1153_s9, %s1702_s1 }
  0x11   : > { %p1403_p11 = pnand %p1051_p9, %p1707_p1 }
  0x13   : > { %p1155_p13 = pneg %p1403_p11 }
  0x15   : > { %p1156_p0 = pnand %p1155_p13, %p1154_p12 }
  0x17   : > { %p1157_p3 = pneg %p1156_p0 }
  0x19   : > { %p1162_p7 = pnand %p1160_p5, %p1157_p3 }
  0x1b   : > { %1165 = shalt.err (!%p1162_p7)
}
  0x1c   : > { %s1166_s14 = scalar_lea.vmem %s1396_s28, 2048  ;;  %p1174_p2 = scmp.lt.s32.totalorder %s1396_s28, %s1396_s28 }
  0x1d   : > { %p1167_p9 = scmp.ne.s32.totalorder %s1396_s28, %s1166_s14  ;;  %p1175_p12 = scmp.lt.s32.totalorder %s1166_s14, %s1166_s14 }
  0x1f   : > { %p1169_p10 = pnand %p1167_p9, %p1155_p13  ;;  %p1176_p0 = por %p1175_p12, %p1174_p2 }
  0x21   : > { %p1170_p1 = pneg %p1169_p10 }
  0x23   : > { %p1177_p6 = pnand %p1176_p0, %p1170_p1 }
  0x25   : > { %1180 = shalt.err (!%p1177_p6)
}
  0x26   : > { %s1313_s15 = smov 128   ;;  %s1314_s16 = smov 8  }
  0x27   : > { %1054 = dma.hbm_to_vmem [thread:$0]  (!%p1403_p11), %s1702_s1, 2048, %s1396_s28, [#allocation6], %s1313_s15, %s1313_s15, %s1314_s16  }
  0x28   : > { %s1181_s7 = scalar_lea.hbm %s1704_s3, 2048 }
  0x29   : > { %p1182_p1 = scmp.ne.s32.totalorder %s1704_s3, %s1181_s7  ;;  %p1188_p10 = scmp.lt.u32.totalorder %s1181_s7, %s1704_s3 }
  0x2b   : > { %p1184_p2 = pnand %p1182_p1, %p1155_p13 }
  0x2d   : > { %p1185_p6 = pneg %p1184_p2 }
  0x2f   : > { %p1190_p3 = pnand %p1188_p10, %p1185_p6 }
  0x31   : > { %1193 = shalt.err (!%p1190_p3)
}
  0x32   : > { %s1194_s28 = scalar_lea.vmem %s1407_s6, 2048  ;;  %p1202_p12 = scmp.lt.s32.totalorder %s1407_s6, %s1407_s6 }
  0x33   : > { %p1195_p5 = scmp.ne.s32.totalorder %s1407_s6, %s1194_s28  ;;  %p1203_p0 = scmp.lt.s32.totalorder %s1194_s28, %s1194_s28 }
  0x35   : > { %p1197_p7 = pnand %p1195_p5, %p1155_p13  ;;  %p1204_p1 = por %p1203_p0, %p1202_p12 }
  0x37   : > { %p1198_p9 = pneg %p1197_p7 }
  0x39   : > { %p1205_p2 = pnand %p1204_p1, %p1198_p9 }
  0x3b   : > { %1208 = shalt.err (!%p1205_p2)
}
  0x3c   : > { %s1315_s12 = smov 64   ;;  %s1316_s13 = smov 4  }
  0x3d   : > { %1057 = dma.hbm_to_vmem [thread:$0]  (!%p1403_p11), %s1704_s3, 2048, %s1407_s6, [#allocation6], %s1315_s12, %s1315_s12, %s1316_s13  }
  0x3e   : > { %s1465_s23 = sadd.s32 1, %s1309_s21   ;;  %s29_s30 = sadd.s32 1, %s1305_s20 }
  0x3f   : > { %s26_s27 = ssub.s32 %s1309_s21, %s1465_s23  ;;  %p36_p6 = scmp.ne.s32.totalorder %s1305_s20, %s1301_s19 }
  0x40   : > { %p27_p13 = scmp.eq.s32.totalorder %s26_s27, 0  ;;  %p37_p10 = scmp.eq.s32.totalorder %s1309_s21, 0 }
  0x41   : > { %p1714_p5 = scmp.eq.s32.totalorder %s1373_s22, 1  ;;  %p1068_p9 = scmp.lt.s32.totalorder %s1309_s21, 2 }
  0x42   : > { %s1474_s7 = scalar_select %p27_p13, %s1305_s20, %s29_s30  }
  0x43   : > { %p38_p3 = por %p37_p10, %p36_p6  ;;  %p1478_p7 = por %p1714_p5, %p36_p6 }
  0x44   : > { %s208_s29 = sand.u32 1, %s1305_s20   ;;  %s973_s6 = sshll.u32 %s1309_s21, 11 }
  0x45   : > { %s1715_s8 = scalar_select %p1478_p7, 1, 0 }
  0x46   : > { %s927_s9 = sshll.u32 %s208_s29, 7  ;;  %s1488_s28 = scalar_lea.hbm %s1701_s0, %s973_s6 }
  0x47   : > { %s212_s12 = scalar_lea.vmem [#allocation2], %s927_s9  ;;  %p1492_p11 = pnand %p1068_p9, %p38_p3 }
  0x48   : > { %s219_s13 = sshll.u32 %s212_s12, 4  ;;  %s1496_s17 = scalar_lea.sflag [#allocation3], %s208_s29  ;;  %s1490_s13 = int_to_ptr.vmem [resolvable:$true] %s219_s13 }
  0x49   : > { %s1209_s27 = scalar_lea.hbm %s1488_s28, 2048  ;;  %p1211_p0 = pneg %p1492_p11 }
  0x4a   : > { %p1210_p12 = scmp.ne.s32.totalorder %s1488_s28, %s1209_s27  ;;  %s1214_s6 = scalar_lea.hbm %s1701_s0, 4096 }
  0x4b   : > { %p1215_p13 = scmp.lt.u32.totalorder %s1488_s28, %s1701_s0  ;;  %p1216_p6 = scmp.lt.u32.totalorder %s1214_s6, %s1209_s27 }
  0x4c   : > { %p1212_p1 = pnand %p1211_p0, %p1210_p12  ;;  %p1218_p3 = scmp.lt.u32.totalorder %s1209_s27, %s1488_s28 }
  0x4d   : > { %p1217_p10 = por %p1216_p6, %p1215_p13 }
  0x4e   : > { %p1213_p2 = pneg %p1212_p1 }
  0x4f   : > { %p1219_p5 = por %p1218_p3, %p1217_p10 }
  0x51   : > { %p1220_p9 = pnand %p1219_p5, %p1213_p2 }
  0x53   : > { %1223 = shalt.err (!%p1220_p9)
}
  0x54   : > { %s1224_s29 = scalar_lea.vmem %s1490_s13, 2048  ;;  %s1317_s12 = smov [#allocation2]  }
  0x55   : > { %p1225_p12 = scmp.ne.s32.totalorder %s1490_s13, %s1224_s29  ;;  %s1229_s30 = sshll.u32 %s1317_s12, 4  ;;  %s1230_s30 = int_to_ptr.vmem [resolvable:$false] %s1229_s30 }
  0x56   : > { %s1231_s9 = scalar_lea.vmem %s1230_s30, 4096  ;;  %p1232_p4 = scmp.lt.s32.totalorder %s1490_s13, %s1230_s30 }
  0x57   : > { %p1227_p1 = pnand %p1225_p12, %p1211_p0  ;;  %p1233_p13 = scmp.lt.s32.totalorder %s1231_s9, %s1224_s29 }
  0x59   : > { %p1228_p7 = pneg %p1227_p1  ;;  %p1234_p6 = por %p1233_p13, %p1232_p4 }
  0x5b   : > { %p1235_p10 = pnand %p1234_p6, %p1228_p7 }
  0x5d   : > { %1238 = shalt.err (!%p1235_p10)
}
  0x5e   : > { %1061 = dma.hbm_to_vmem [thread:$0]  (!%p1492_p11), %s1488_s28, 2048, %s1490_s13, %s1496_s17, %s1313_s15, %s1313_s15, %s1314_s16  }
  0x5f   : > { %231 = sbr.rel (%p1392_p8) target bundleno = 651 (0x28b), region = 40  ;;  %s1530_s27 = sand.u32 (!%p1392_p8), 1, %s1301_s19  }
  0x60   : > { %s931_s6 = sshll.u32 (!%p1392_p8), %s1530_s27, 7  ;;  %s234_s10 = scalar_lea.sflag (!%p1392_p8), [#allocation3], %s1530_s27 }
  0x61   : > { %s1536_s14 = scalar_lea.vmem (!%p1392_p8), [#allocation2], %s931_s6  ;;  %p1717_p4 = scmp.ne.s32.totalorder (!%p1392_p8), %s1710_s24, 0 }
  0x66   : > { %1284 = dma.done.wait (%p1717_p4), %s234_s10, 2048  }
  0x67   : > { %1286 = vsyncadd (%p1717_p4), %s234_s10, 4294965248  ;;  %p1718_p7 = scmp.eq.s32.totalorder %s1373_s22, 0 }
  0x69   : > { %1288 = dma.done.wait (%p1718_p7), [#allocation6], 4096   ;;  %p1719_p8 = pmov %p1718_p7 }
  0x6a   : > { %v1318_v0 = vmov 0   ;;  %v1113_v1 = vld [vmem:[#allocation5 + $0x4] ss:$8 sps:$4 sm:$0xff]   ;;  %v1115_v2 = vld [vmem:[#allocation5] ss:$8 sps:$4 sm:$0xff]   ;;  %v1141_v18 = vld [vmem:[#allocation7 + $0x50] sm:$0xff]   ;;  %v349_v57 = vlaneseq }
  0x6b   : > { %1290 = vsyncadd (%p1719_p8), [#allocation6], 4294963200  ;;  %471 = vmatprep.mubr.bf16.mxu0 %v1318_v0  ;;  %439 = vmatprep.subr.bf16.mxu0 %v1113_v1  ;;  %v1116_v3 = vld [vmem:[#allocation5 + $0x14] ss:$8 sps:$4 sm:$0xff]   ;;  %v1118_v4 = vld [vmem:[#allocation5 + $0x10] ss:$8 sps:$4 sm:$0xff]  }
  0x6c   : > { %440 = vmatpush1.bf16.msra.mxu0 %v1115_v2  ;;  %v1119_v5 = vld [vmem:[#allocation5 + $0x24] ss:$8 sps:$4 sm:$0xff]   ;;  %v1121_v6 = vld [vmem:[#allocation5 + $0x20] ss:$8 sps:$4 sm:$0xff]   ;;  %v1122_v7 = vld [vmem:[#allocation5 + $0x34] ss:$8 sps:$4 sm:$0xff]  }
  0x6d   : > { %441 = vmatprep.subr.bf16.mxu0 %v1116_v3  ;;  %v1124_v8 = vld [vmem:[#allocation5 + $0x30] ss:$8 sps:$4 sm:$0xff]   ;;  %v1125_v9 = vld [vmem:[#allocation5 + $0x44] ss:$8 sps:$4 sm:$0xff]   ;;  %v1127_v10 = vld [vmem:[#allocation5 + $0x40] ss:$8 sps:$4 sm:$0xff]  }
  0x6e   : > { %v1128_v11 = vld [vmem:[#allocation5 + $0x54] ss:$8 sps:$4 sm:$0xff]   ;;  %v1137_v12 = vld [vmem:[#allocation7 + $0x40] sm:$0xff]   ;;  %v1130_v13 = vld [vmem:[#allocation5 + $0x50] ss:$8 sps:$4 sm:$0xff]   ;;  %v350_v58 = vshrl.u32 %v349_v57, 7 }
  0x6f   : > { %v1138_v14 = vld [vmem:[#allocation7] sm:$0xff]   ;;  %975 = vmatprep.subr.bf16.mxu1 %v1137_v12  ;;  %v1139_v16 = vld [vmem:[#allocation7 + $0x48] sm:$0xff]   ;;  %v1134_v20 = vld [vmem:[#allocation5 + $0x74] ss:$8 sps:$4 sm:$0xff]   ;;  %s1617_s28 = scalar_lea.vmem [#allocation8], %s931_s6  ;;  %s974_s13 = sshll.u32 %s1373_s22, 11 }
  0x70   : > { %442 = vmatpush1.bf16.msra.mxu0 %v1118_v4  ;;  %v1131_v15 = vld [vmem:[#allocation5 + $0x64] ss:$8 sps:$4 sm:$0xff]   ;;  %976 = vmatpush3.bf16.msra.mxu1 %v1138_v14  ;;  %v1133_v19 = vld [vmem:[#allocation5 + $0x60] ss:$8 sps:$4 sm:$0xff]   ;;  %v1142_v21 = vld [vmem:[#allocation7 + $0x10] sm:$0xff]   ;;  %v351_v59 = vsub.s32 0, %v350_v58  ;;  %s1652_s12 = scalar_lea.hbm %s1706_s5, %s974_s13 }
  0x71   : > { %443 = vmatprep.subr.bf16.mxu0 %v1119_v5  ;;  %v1140_v17 = vld [vmem:[#allocation7 + $0x8] sm:$0xff]   ;;  %977 = vmatprep.subr.bf16.mxu1 %v1139_v16  ;;  %v1143_v22 = vld [vmem:[#allocation7 + $0x58] sm:$0xff]   ;;  %v323_v24 = vld [vmem:[%s1536_s14] sm:$0xff]  ;;  %v355_v61 = vsub.s32 1, %v350_v58  ;;  %s830_s17 = sshll.u32 %s1617_s28, 4  ;;  %s817_s22 = scalar_lea.sflag [#allocation4], %s1530_s27  ;;  %s1654_s17 = int_to_ptr.vmem [resolvable:$true] %s830_s17 }
  0x72   : > { %v1136_v23 = vld [vmem:[#allocation5 + $0x70] ss:$8 sps:$4 sm:$0xff]   ;;  %v324_v25 = vld [vmem:[%s1536_s14 + $0x8] sm:$0xff]  ;;  %v1145_v27 = vld [vmem:[#allocation7 + $0x60] sm:$0xff]   ;;  %s1239_s30 = scalar_lea.vmem %s1654_s17, 2048  ;;  %p1720_p0 = scmp.ne.s32.totalorder %s1715_s8, 0 }
  0x73   : > { %v1144_v26 = vld [vmem:[#allocation7 + $0x18] sm:$0xff]   ;;  %v339_v28 = vpack.c.bf16 %v324_v25, %v323_v24  ;;  %v1146_v29 = vld [vmem:[#allocation7 + $0x20] sm:$0xff]   ;;  %v1147_v30 = vld [vmem:[#allocation7 + $0x68] sm:$0xff]   ;;  %p1240_p11 = scmp.ne.s32.totalorder %s1654_s17, %s1239_s30  ;;  %s1319_s9 = smov [#allocation8]  }
  0x74   : > { %444 = vmatpush1.bf16.msra.mxu0 %v1121_v6  ;;  %978 = vmatpush3.bf16.msra.mxu1 %v1140_v17  ;;  %v325_v31 = vld [vmem:[%s1536_s14 + $0x10] sm:$0xff]  ;;  %v326_v32 = vld [vmem:[%s1536_s14 + $0x18] sm:$0xff]  ;;  %v327_v34 = vld [vmem:[%s1536_s14 + $0x20] sm:$0xff]  ;;  %s1243_s6 = sshll.u32 %s1319_s9, 4  ;;  %s1244_s6 = int_to_ptr.vmem [resolvable:$false] %s1243_s6 }
  0x75   : > { %445 = vmatprep.subr.bf16.mxu0 %v1122_v7  ;;  %979 = vmatprep.subr.bf16.mxu1 %v1141_v18  ;;  %v340_v33 = vpack.c.bf16 %v326_v32, %v325_v31  ;;  %v328_v35 = vld [vmem:[%s1536_s14 + $0x28] sm:$0xff]  ;;  %v329_v37 = vld [vmem:[%s1536_s14 + $0x30] sm:$0xff]  ;;  %v330_v38 = vld [vmem:[%s1536_s14 + $0x38] sm:$0xff]  ;;  %p1241_p2 = pnand %p1240_p11, %p1720_p0  ;;  %s1245_s10 = scalar_lea.vmem %s1244_s6, 4096 }
  0x76   : > { %v341_v36 = vpack.c.bf16 %v328_v35, %v327_v34  ;;  %v342_v39 = vpack.c.bf16 %v330_v38, %v329_v37  ;;  %v331_v40 = vld [vmem:[%s1536_s14 + $0x40] sm:$0xff]  ;;  %v332_v41 = vld [vmem:[%s1536_s14 + $0x48] sm:$0xff]  ;;  %v333_v43 = vld [vmem:[%s1536_s14 + $0x50] sm:$0xff]  ;;  %p1246_p5 = scmp.lt.s32.totalorder %s1654_s17, %s1244_s6  ;;  %p1247_p9 = scmp.lt.s32.totalorder %s1245_s10, %s1239_s30 }
  0x77   : > { %v343_v42 = vpack.c.bf16 %v332_v41, %v331_v40  ;;  %v334_v44 = vld [vmem:[%s1536_s14 + $0x58] sm:$0xff]  ;;  %v335_v46 = vld [vmem:[%s1536_s14 + $0x60] sm:$0xff]  ;;  %v336_v47 = vld [vmem:[%s1536_s14 + $0x68] sm:$0xff]  ;;  %p1242_p3 = pneg %p1241_p2 }
  0x78   : > { %446 = vmatpush1.bf16.msra.mxu0 %v1124_v8  ;;  %980 = vmatpush3.bf16.msra.mxu1 %v1142_v21  ;;  %v344_v45 = vpack.c.bf16 %v334_v44, %v333_v43  ;;  %v345_v48 = vpack.c.bf16 %v336_v47, %v335_v46  ;;  %v337_v49 = vld [vmem:[%s1536_s14 + $0x70] sm:$0xff]  ;;  %v338_v50 = vld [vmem:[%s1536_s14 + $0x78] sm:$0xff]  ;;  %v1148_v52 = vld [vmem:[#allocation7 + $0x28] sm:$0xff]   ;;  %p1248_p12 = por %p1247_p9, %p1246_p5 }
  0x79   : > { %447 = vmatprep.subr.bf16.mxu0 %v1125_v9  ;;  %981 = vmatprep.subr.bf16.mxu1 %v1143_v22  ;;  %v346_v51 = vpack.c.bf16 %v338_v50, %v337_v49  ;;  %v1149_v53 = vld [vmem:[#allocation7 + $0x70] sm:$0xff]   ;;  %v1151_v55 = vld [vmem:[#allocation7 + $0x78] sm:$0xff]   ;;  %v347_v60 = vld [vmem:[%s1703_s2] sm:$0x3] }
  0x7a   : > { %v1150_v54 = vld [vmem:[#allocation7 + $0x30] sm:$0xff]   ;;  %v1152_v56 = vld [vmem:[#allocation7 + $0x38] sm:$0xff]   ;;  %v1573_v62 = vrot.slane %v347_v60, %v351_v59  ;;  %v1575_v63 = vrot.slane %v347_v60, %v355_v61  ;;  %p1249_p1 = pnand %p1248_p12, %p1242_p3 }
  0x7c   : > { %448 = vmatpush1.bf16.msra.mxu0 %v1127_v10  ;;  %982 = vmatpush3.bf16.msra.mxu1 %v1144_v26 }
  0x7d   : > { %449 = vmatprep.subr.bf16.mxu0 %v1128_v11  ;;  %983 = vmatprep.subr.bf16.mxu1 %v1145_v27 }
  0x80   : > { %450 = vmatpush1.bf16.msra.mxu0 %v1130_v13  ;;  %984 = vmatpush3.bf16.msra.mxu1 %v1146_v29 }
  0x81   : > { %451 = vmatprep.subr.bf16.mxu0 %v1131_v15  ;;  %985 = vmatprep.subr.bf16.mxu1 %v1147_v30 }
  0x84   : > { %452 = vmatpush1.bf16.msra.mxu0 %v1133_v19  ;;  %986 = vmatpush3.bf16.msra.mxu1 %v1148_v52 }
  0x85   : > { %453 = vmatprep.subr.bf16.mxu0 %v1134_v20  ;;  %987 = vmatprep.subr.bf16.mxu1 %v1149_v53 }
  0x88   : > { %454 = vmatpush1.bf16.msra.mxu0 %v1136_v23  ;;  %988 = vmatpush3.bf16.msra.mxu1 %v1150_v54 }
  0x89   : > { %989 = vmatprep.subr.bf16.mxu1 %v1151_v55 }
  0x8b   : > { %472 = vmatmul.mubr.bf16.vlgmr.msra.gmra.mrb[0].mxu0 %v339_v28 }
  0x8c   : > { %481 = vmatprep.mubr.bf16.mxu0 %v1318_v0  ;;  %990 = vmatpush3.bf16.msra.mxu1 %v1152_v56 }
  0x93   : > { %482 = vmatmul.mubr.bf16.gmra.mrb[4].mxu0 %v340_v33 }
  0x94   : > { %491 = vmatprep.mubr.bf16.mxu0 %v1318_v0 }
  0x9b   : > { %492 = vmatmul.mubr.bf16.gmra.mrb[8].mxu0 %v341_v36 }
  0x9c   : > { %501 = vmatprep.mubr.bf16.mxu0 %v1318_v0 }
  0xa3   : > { %502 = vmatmul.mubr.bf16.gmra.mrb[12].mxu0 %v342_v39 }
  0xa4   : > { %511 = vmatprep.mubr.bf16.mxu0 %v1318_v0 }
  0xab   : > { %512 = vmatmul.mubr.bf16.gmra.mrb[16].mxu0 %v343_v42 }
  0xac   : > { %521 = vmatprep.mubr.bf16.mxu0 %v1318_v0 }
  0xb3   : > { %522 = vmatmul.mubr.bf16.gmra.mrb[20].mxu0 %v344_v45 }
  0xb4   : > { %531 = vmatprep.mubr.bf16.mxu0 %v1318_v0 }
  0xbb   : > { %532 = vmatmul.mubr.bf16.gmra.mrb[24].mxu0 %v345_v48 }
  0xbc   : > { %541 = vmatprep.mubr.bf16.mxu0 %v1318_v0 }
  0xc3   : > { %542 = vmatmul.mubr.bf16.gmra.mrb[28].mxu0 %v346_v51 }
 0x15e   : > { %v473_v0 = vpop.f32.mrb[0].mxu0 }
 0x15f   : > { %v474_v1 = vadd.f32 %v473_v0, %v1573_v62  ;;  %v475_v2 = vpop.f32.mrb[1].mxu0 }
 0x160   : > { %v476_v3 = vadd.f32 %v475_v2, %v1575_v63  ;;  %v477_v4 = vpop.f32.mrb[2].mxu0 }
 0x161   : > { %v478_v5 = vadd.f32 %v477_v4, %v1573_v62  ;;  %v479_v6 = vpop.f32.mrb[3].mxu0  ;;  %v552_v8 = vmax.f32 %v474_v1, 0.0 }
 0x162   : > { %v480_v7 = vadd.f32 %v479_v6, %v1575_v63  ;;  %v553_v10 = vmax.f32 %v476_v3, 0.0 }
 0x163   : > { %v554_v9 = vmax.f32 %v478_v5, 0.0 }
 0x164   : > { %v555_v11 = vmax.f32 %v480_v7, 0.0 }
 0x165   : > { %v584_v12 = vpack.c.bf16 %v554_v9, %v552_v8 }
 0x166   : > { %v483_v13 = vpop.f32.mrb[4].mxu0  ;;  %v585_v14 = vpack.c.bf16 %v555_v11, %v553_v10 }
 0x167   : > { %v484_v15 = vadd.f32 %v483_v13, %v1573_v62  ;;  %v485_v16 = vpop.f32.mrb[5].mxu0 }
 0x168   : > { %v486_v17 = vadd.f32 %v485_v16, %v1575_v63  ;;  %v487_v18 = vpop.f32.mrb[6].mxu0  ;;  %735 = vmatprep.mubr.bf16.mxu1 %v585_v14 }
 0x169   : > { %v488_v19 = vadd.f32 %v487_v18, %v1573_v62  ;;  %v489_v20 = vpop.f32.mrb[7].mxu0  ;;  %736 = vmatmul.mubr.bf16.vlgmr.msra.gmra.mrb[0].mxu1 %v584_v12  ;;  %v556_v22 = vmax.f32 %v484_v15, 0.0 }
 0x16a   : > { %v490_v21 = vadd.f32 %v489_v20, %v1575_v63  ;;  %v557_v24 = vmax.f32 %v486_v17, 0.0 }
 0x16b   : > { %v558_v23 = vmax.f32 %v488_v19, 0.0 }
 0x16c   : > { %v559_v25 = vmax.f32 %v490_v21, 0.0 }
 0x16d   : > { %v586_v26 = vpack.c.bf16 %v558_v23, %v556_v22 }
 0x16e   : > { %v587_v27 = vpack.c.bf16 %v559_v25, %v557_v24  ;;  %v493_v28 = vpop.f32.mrb[8].mxu0 }
 0x16f   : > { %v494_v29 = vadd.f32 %v493_v28, %v1573_v62  ;;  %v495_v30 = vpop.f32.mrb[9].mxu0 }
 0x170   : > { %v496_v31 = vadd.f32 %v495_v30, %v1575_v63  ;;  %v497_v32 = vpop.f32.mrb[10].mxu0  ;;  %743 = vmatprep.mubr.bf16.mxu1 %v587_v27 }
 0x171   : > { %v498_v33 = vadd.f32 %v497_v32, %v1573_v62  ;;  %v499_v34 = vpop.f32.mrb[11].mxu0  ;;  %744 = vmatmul.mubr.bf16.gmra.mrb[4].mxu1 %v586_v26  ;;  %v560_v36 = vmax.f32 %v494_v29, 0.0 }
 0x172   : > { %v500_v35 = vadd.f32 %v499_v34, %v1575_v63  ;;  %v561_v38 = vmax.f32 %v496_v31, 0.0 }
 0x173   : > { %v562_v37 = vmax.f32 %v498_v33, 0.0 }
 0x174   : > { %v563_v39 = vmax.f32 %v500_v35, 0.0 }
 0x175   : > { %v588_v40 = vpack.c.bf16 %v562_v37, %v560_v36 }
 0x176   : > { %v589_v41 = vpack.c.bf16 %v563_v39, %v561_v38  ;;  %v503_v42 = vpop.f32.mrb[12].mxu0 }
 0x177   : > { %v504_v43 = vadd.f32 %v503_v42, %v1573_v62  ;;  %v505_v44 = vpop.f32.mrb[13].mxu0 }
 0x178   : > { %v506_v45 = vadd.f32 %v505_v44, %v1575_v63  ;;  %v507_v46 = vpop.f32.mrb[14].mxu0  ;;  %751 = vmatprep.mubr.bf16.mxu1 %v589_v41 }
 0x179   : > { %v508_v47 = vadd.f32 %v507_v46, %v1573_v62  ;;  %v509_v48 = vpop.f32.mrb[15].mxu0  ;;  %752 = vmatmul.mubr.bf16.gmra.mrb[8].mxu1 %v588_v40  ;;  %v564_v50 = vmax.f32 %v504_v43, 0.0 }
 0x17a   : > { %v510_v49 = vadd.f32 %v509_v48, %v1575_v63  ;;  %v565_v52 = vmax.f32 %v506_v45, 0.0 }
 0x17b   : > { %v566_v51 = vmax.f32 %v508_v47, 0.0 }
 0x17c   : > { %v567_v53 = vmax.f32 %v510_v49, 0.0 }
 0x17d   : > { %v590_v54 = vpack.c.bf16 %v566_v51, %v564_v50  ;;  %v1612_v51 = vld [vmem:[%s1705_s4] ss:$0 sm:$0xff] }
 0x17e   : > { %v591_v55 = vpack.c.bf16 %v567_v53, %v565_v52  ;;  %v513_v56 = vpop.f32.mrb[16].mxu0 }
 0x17f   : > { %v514_v57 = vadd.f32 %v513_v56, %v1573_v62  ;;  %v515_v58 = vpop.f32.mrb[17].mxu0 }
 0x180   : > { %v516_v59 = vadd.f32 %v515_v58, %v1575_v63  ;;  %v517_v60 = vpop.f32.mrb[18].mxu0  ;;  %759 = vmatprep.mubr.bf16.mxu1 %v591_v55 }
 0x181   : > { %v518_v61 = vadd.f32 %v517_v60, %v1573_v62  ;;  %v519_v0 = vpop.f32.mrb[19].mxu0  ;;  %760 = vmatmul.mubr.bf16.gmra.mrb[12].mxu1 %v590_v54  ;;  %v568_v2 = vmax.f32 %v514_v57, 0.0 }
 0x182   : > { %v520_v1 = vadd.f32 %v519_v0, %v1575_v63  ;;  %v569_v4 = vmax.f32 %v516_v59, 0.0 }
 0x183   : > { %v570_v3 = vmax.f32 %v518_v61, 0.0 }
 0x184   : > { %v571_v5 = vmax.f32 %v520_v1, 0.0 }
 0x185   : > { %v592_v6 = vpack.c.bf16 %v570_v3, %v568_v2 }
 0x186   : > { %v593_v7 = vpack.c.bf16 %v571_v5, %v569_v4  ;;  %v523_v8 = vpop.f32.mrb[20].mxu0 }
 0x187   : > { %v524_v9 = vadd.f32 %v523_v8, %v1573_v62  ;;  %v525_v10 = vpop.f32.mrb[21].mxu0 }
 0x188   : > { %v526_v11 = vadd.f32 %v525_v10, %v1575_v63  ;;  %v527_v12 = vpop.f32.mrb[22].mxu0  ;;  %767 = vmatprep.mubr.bf16.mxu1 %v593_v7 }
 0x189   : > { %v528_v13 = vadd.f32 %v527_v12, %v1573_v62  ;;  %v529_v14 = vpop.f32.mrb[23].mxu0  ;;  %768 = vmatmul.mubr.bf16.gmra.mrb[16].mxu1 %v592_v6  ;;  %v572_v16 = vmax.f32 %v524_v9, 0.0 }
 0x18a   : > { %v530_v15 = vadd.f32 %v529_v14, %v1575_v63  ;;  %v573_v18 = vmax.f32 %v526_v11, 0.0 }
 0x18b   : > { %v574_v17 = vmax.f32 %v528_v13, 0.0 }
 0x18c   : > { %v575_v19 = vmax.f32 %v530_v15, 0.0 }
 0x18d   : > { %v594_v20 = vpack.c.bf16 %v574_v17, %v572_v16 }
 0x18e   : > { %v595_v21 = vpack.c.bf16 %v575_v19, %v573_v18  ;;  %v533_v22 = vpop.f32.mrb[24].mxu0 }
 0x18f   : > { %v534_v23 = vadd.f32 %v533_v22, %v1573_v62  ;;  %v535_v24 = vpop.f32.mrb[25].mxu0 }
 0x190   : > { %v536_v25 = vadd.f32 %v535_v24, %v1575_v63  ;;  %v537_v26 = vpop.f32.mrb[26].mxu0  ;;  %775 = vmatprep.mubr.bf16.mxu1 %v595_v21 }
 0x191   : > { %v538_v27 = vadd.f32 %v537_v26, %v1573_v62  ;;  %v539_v28 = vpop.f32.mrb[27].mxu0  ;;  %776 = vmatmul.mubr.bf16.gmra.mrb[20].mxu1 %v594_v20  ;;  %v576_v30 = vmax.f32 %v534_v23, 0.0 }
 0x192   : > { %v540_v29 = vadd.f32 %v539_v28, %v1575_v63  ;;  %v577_v32 = vmax.f32 %v536_v25, 0.0 }
 0x193   : > { %v578_v31 = vmax.f32 %v538_v27, 0.0 }
 0x194   : > { %v579_v33 = vmax.f32 %v540_v29, 0.0 }
 0x195   : > { %v596_v34 = vpack.c.bf16 %v578_v31, %v576_v30 }
 0x196   : > { %v597_v35 = vpack.c.bf16 %v579_v33, %v577_v32  ;;  %v543_v36 = vpop.f32.mrb[28].mxu0 }
 0x197   : > { %v544_v37 = vadd.f32 %v543_v36, %v1573_v62  ;;  %v545_v38 = vpop.f32.mrb[29].mxu0 }
 0x198   : > { %v546_v39 = vadd.f32 %v545_v38, %v1575_v63  ;;  %v547_v40 = vpop.f32.mrb[30].mxu0  ;;  %783 = vmatprep.mubr.bf16.mxu1 %v597_v35 }
 0x199   : > { %v548_v41 = vadd.f32 %v547_v40, %v1573_v62  ;;  %v549_v42 = vpop.f32.mrb[31].mxu0  ;;  %784 = vmatmul.mubr.bf16.gmra.mrb[24].mxu1 %v596_v34  ;;  %v580_v44 = vmax.f32 %v544_v37, 0.0 }
 0x19a   : > { %v550_v43 = vadd.f32 %v549_v42, %v1575_v63  ;;  %v581_v46 = vmax.f32 %v546_v39, 0.0 }
 0x19b   : > { %v582_v45 = vmax.f32 %v548_v41, 0.0 }
 0x19c   : > { %v583_v47 = vmax.f32 %v550_v43, 0.0 }
 0x19d   : > { %v598_v48 = vpack.c.bf16 %v582_v45, %v580_v44 }
 0x19e   : > { %v599_v49 = vpack.c.bf16 %v583_v47, %v581_v46 }
 0x1a0   : > { %791 = vmatprep.mubr.bf16.mxu1 %v599_v49 }
 0x1a1   : > { %792 = vmatmul.mubr.bf16.gmra.mrb[28].mxu1 %v598_v48 }
 0x23c   : > { %v991_v50 = vpop.f32.mrb[0].mxu1 }
 0x23d   : > { %v992_v62 = vpop.f32.mrb[1].mxu1 }
 0x23e   : > { %v993_v52 = vadd.f32 %v992_v62, %v991_v50  ;;  %v994_v53 = vpop.f32.mrb[2].mxu1 }
 0x23f   : > { %v995_v54 = vpop.f32.mrb[3].mxu1 }
 0x240   : > { %v738_v63 = vadd.f32 %v993_v52, %v1612_v51  ;;  %v996_v55 = vadd.f32 %v995_v54, %v994_v53 }
 0x242   : > { %800 = vst [vmem:[%s1617_s28] sm:$0xff] %v738_v63  ;;  %v741_v56 = vadd.f32 %v996_v55, %v1612_v51 }
 0x244   : > { %801 = vst [vmem:[%s1617_s28 + $0x8] sm:$0xff] %v741_v56  ;;  %v997_v57 = vpop.f32.mrb[4].mxu1 }
 0x245   : > { %v998_v58 = vpop.f32.mrb[5].mxu1 }
 0x246   : > { %v999_v59 = vadd.f32 %v998_v58, %v997_v57  ;;  %v1000_v60 = vpop.f32.mrb[6].mxu1 }
 0x247   : > { %v1001_v61 = vpop.f32.mrb[7].mxu1 }
 0x248   : > { %v746_v0 = vadd.f32 %v999_v59, %v1612_v51  ;;  %v1002_v1 = vadd.f32 %v1001_v61, %v1000_v60 }
 0x24a   : > { %802 = vst [vmem:[%s1617_s28 + $0x10] sm:$0xff] %v746_v0  ;;  %v749_v2 = vadd.f32 %v1002_v1, %v1612_v51 }
 0x24c   : > { %803 = vst [vmem:[%s1617_s28 + $0x18] sm:$0xff] %v749_v2  ;;  %v1003_v3 = vpop.f32.mrb[8].mxu1 }
 0x24d   : > { %v1004_v4 = vpop.f32.mrb[9].mxu1 }
 0x24e   : > { %v1005_v5 = vadd.f32 %v1004_v4, %v1003_v3  ;;  %v1006_v6 = vpop.f32.mrb[10].mxu1 }
 0x24f   : > { %v1007_v7 = vpop.f32.mrb[11].mxu1 }
 0x250   : > { %v754_v8 = vadd.f32 %v1005_v5, %v1612_v51  ;;  %v1008_v9 = vadd.f32 %v1007_v7, %v1006_v6 }
 0x252   : > { %804 = vst [vmem:[%s1617_s28 + $0x20] sm:$0xff] %v754_v8  ;;  %v757_v10 = vadd.f32 %v1008_v9, %v1612_v51 }
 0x254   : > { %805 = vst [vmem:[%s1617_s28 + $0x28] sm:$0xff] %v757_v10  ;;  %v1009_v11 = vpop.f32.mrb[12].mxu1 }
 0x255   : > { %v1010_v12 = vpop.f32.mrb[13].mxu1 }
 0x256   : > { %v1011_v13 = vadd.f32 %v1010_v12, %v1009_v11  ;;  %v1012_v14 = vpop.f32.mrb[14].mxu1 }
 0x257   : > { %v1013_v15 = vpop.f32.mrb[15].mxu1 }
 0x258   : > { %v762_v16 = vadd.f32 %v1011_v13, %v1612_v51  ;;  %v1014_v17 = vadd.f32 %v1013_v15, %v1012_v14 }
 0x25a   : > { %806 = vst [vmem:[%s1617_s28 + $0x30] sm:$0xff] %v762_v16  ;;  %v765_v18 = vadd.f32 %v1014_v17, %v1612_v51 }
 0x25c   : > { %807 = vst [vmem:[%s1617_s28 + $0x38] sm:$0xff] %v765_v18  ;;  %v1015_v19 = vpop.f32.mrb[16].mxu1 }
 0x25d   : > { %v1016_v20 = vpop.f32.mrb[17].mxu1 }
 0x25e   : > { %v1017_v21 = vadd.f32 %v1016_v20, %v1015_v19  ;;  %v1018_v22 = vpop.f32.mrb[18].mxu1 }
 0x25f   : > { %v1019_v23 = vpop.f32.mrb[19].mxu1 }
 0x260   : > { %v770_v24 = vadd.f32 %v1017_v21, %v1612_v51  ;;  %v1020_v25 = vadd.f32 %v1019_v23, %v1018_v22 }
 0x262   : > { %808 = vst [vmem:[%s1617_s28 + $0x40] sm:$0xff] %v770_v24  ;;  %v773_v26 = vadd.f32 %v1020_v25, %v1612_v51 }
 0x264   : > { %809 = vst [vmem:[%s1617_s28 + $0x48] sm:$0xff] %v773_v26  ;;  %v1021_v27 = vpop.f32.mrb[20].mxu1 }
 0x265   : > { %v1022_v28 = vpop.f32.mrb[21].mxu1 }
 0x266   : > { %v1023_v29 = vadd.f32 %v1022_v28, %v1021_v27  ;;  %v1024_v30 = vpop.f32.mrb[22].mxu1 }
 0x267   : > { %v1025_v31 = vpop.f32.mrb[23].mxu1 }
 0x268   : > { %v778_v32 = vadd.f32 %v1023_v29, %v1612_v51  ;;  %v1026_v33 = vadd.f32 %v1025_v31, %v1024_v30 }
 0x26a   : > { %810 = vst [vmem:[%s1617_s28 + $0x50] sm:$0xff] %v778_v32  ;;  %v781_v34 = vadd.f32 %v1026_v33, %v1612_v51 }
 0x26c   : > { %811 = vst [vmem:[%s1617_s28 + $0x58] sm:$0xff] %v781_v34  ;;  %v1027_v35 = vpop.f32.mrb[24].mxu1 }
 0x26d   : > { %v1028_v36 = vpop.f32.mrb[25].mxu1 }
 0x26e   : > { %v1029_v37 = vadd.f32 %v1028_v36, %v1027_v35  ;;  %v1030_v38 = vpop.f32.mrb[26].mxu1 }
 0x26f   : > { %v1031_v39 = vpop.f32.mrb[27].mxu1 }
 0x270   : > { %v786_v40 = vadd.f32 %v1029_v37, %v1612_v51  ;;  %v1032_v41 = vadd.f32 %v1031_v39, %v1030_v38 }
 0x272   : > { %812 = vst [vmem:[%s1617_s28 + $0x60] sm:$0xff] %v786_v40  ;;  %v789_v42 = vadd.f32 %v1032_v41, %v1612_v51 }
 0x274   : > { %813 = vst [vmem:[%s1617_s28 + $0x68] sm:$0xff] %v789_v42  ;;  %v1033_v43 = vpop.f32.mrb[28].mxu1 }
 0x275   : > { %v1034_v44 = vpop.f32.mrb[29].mxu1 }
 0x276   : > { %v1035_v45 = vadd.f32 %v1034_v44, %v1033_v43  ;;  %v1036_v46 = vpop.f32.mrb[30].mxu1 }
 0x277   : > { %v1037_v47 = vpop.f32.mrb[31].mxu1 }
 0x278   : > { %v794_v48 = vadd.f32 %v1035_v45, %v1612_v51  ;;  %v1038_v49 = vadd.f32 %v1037_v47, %v1036_v46 }
 0x27a   : > { %814 = vst [vmem:[%s1617_s28 + $0x70] sm:$0xff] %v794_v48  ;;  %v797_v50 = vadd.f32 %v1038_v49, %v1612_v51 }
 0x27c   : > { %815 = vst [vmem:[%s1617_s28 + $0x78] sm:$0xff] %v797_v50 }
 0x27d   : > { %1252 = shalt.err (!%p1249_p1)
}
 0x27e   : > { %s1253_s14 = scalar_lea.hbm %s1652_s12, 2048  ;;  %s1257_s15 = scalar_lea.hbm %s1706_s5, 4096 }
 0x27f   : > { %p1254_p13 = scmp.ne.s32.totalorder %s1652_s12, %s1253_s14  ;;  %p1258_p4 = scmp.lt.u32.totalorder %s1652_s12, %s1706_s5 }
 0x280   : > { %p1259_p7 = scmp.lt.u32.totalorder %s1257_s15, %s1253_s14  ;;  %p1261_p11 = scmp.lt.u32.totalorder %s1253_s14, %s1652_s12 }
 0x281   : > { %p1255_p6 = pnand %p1254_p13, %p1720_p0 }
 0x282   : > { %p1260_p8 = por %p1259_p7, %p1258_p4 }
 0x283   : > { %p1256_p10 = pneg %p1255_p6 }
 0x284   : > { %p1262_p2 = por %p1261_p11, %p1260_p8 }
 0x286   : > { %p1263_p3 = pnand %p1262_p2, %p1256_p10 }
 0x288   : > { %1266 = shalt.err (!%p1263_p3)
}
 0x289   : > { %s1320_s13 = smov 128   ;;  %s1321_s11 = smov 8  }
 0x28a   : > { %1049 = dma.vmem_to_hbm [thread:$0]  (%p1720_p0), %s1654_s17, 2048, %s1652_s12, %s817_s22, %s1320_s13, %s1320_s13, %s1321_s11  }
 0x28b PF: > { %s845_s29 = sand.u32 1, %s1297_s18   ;;  %p1721_p5 = scmp.ne.s32.totalorder %s1711_s25, 0 }
 0x28c   : > { %p1722_p9 = scmp.ge.s32.totalorder %s1309_s21, 2  ;;  %s846_s30 = scalar_lea.sflag [#allocation4], %s845_s29 }
 0x28e   : > { %p1063_p12 = pnand %p1722_p9, %p1721_p5 }
 0x290   : > { %1292 = dma.done.wait (!%p1063_p12), %s846_s30, 2048  }
 0x291   : > { %1294 = vsyncadd (!%p1063_p12), %s846_s30, 4294965248  ;;  %p19_p1 = scmp.ge.s32.totalorder %s1465_s23, 4   ;;  %s1723_s18 = smov %s1301_s19 }
 0x292   : > { %s1724_s19 = smov %s1305_s20  ;;  %s1725_s20 = smov %s1474_s7 }
 0x293   : > { %s1726_s21 = smov %s1465_s23  ;;  %21 = sbr.rel (!%p19_p1) target bundleno = 6 (0x6), region = 93 }
 0x29a   :  { %851 = vsyncpa [#allocation3], 1 }
 0x29b   :  { %853 = vsyncpa [#allocation3 + $0x1], 1 }
 0x29c   :  { %854 = vsyncpa [#allocation6], 1 }
 0x29d   :  { %855 = vsyncpa [#allocation4], 1 }
 0x29e   :  { %857 = vsyncpa [#allocation4 + $0x1], 1 }

</bundles_post_ra>
